<compile_context>
chip_gen: v6e
topology: v6e:2x2x1
jax: 0.10.0
libtpu: 0.0.40
codegen_flags: <defaults>
</compile_context>

<pallas_src>
import functools

import jax
import jax.numpy as jnp
import numpy as np
from jax.experimental import pallas as pl
from jax.experimental.pallas import tpu as pltpu


# ---------------------------------------------------------------------------
# One-off probe: pin down pltpu.roll's rotate convention (cached Python bool,
# computed eagerly in main and passed to the kernel as a static flag).
# ---------------------------------------------------------------------------
@functools.lru_cache(maxsize=None)
def _roll_matches_jnp() -> bool:
    """True iff pltpu.roll(x, s, axis) == jnp.roll(x, s, axis)."""
    def k(x_ref, o_ref):
        o_ref[...] = pltpu.roll(x_ref[...], 1, 1)

    x = jnp.arange(128, dtype=jnp.float32).reshape(1, 128)
    out = pl.pallas_call(
        k, out_shape=jax.ShapeDtypeStruct((1, 128), jnp.float32))(x)
    return bool(np.asarray(out)[0, 0] > 64.0)   # jnp.roll: out[0] == 127


def _make_fused_kernel(n_blk, H, W, K, roll_like_jnp):
    HW = H * W
    LB = n_blk * HW                      # flattened (sample, spatial) lanes/step
    Ho2, Wo2 = H - 2 * (K - 1), W - 2 * (K - 1)
    OFFS = [ki * W + kj for ki in range(K) for kj in range(K)]

    def kernel(x_ref, w1_ref, b1_ref, w2_ref, b2_ref,
               wf1_ref, bf1_ref, wf2_ref, bf2_ref,
               o_ref, p1_ref, p2_ref, act_ref):
        f32, bf16 = jnp.float32, jnp.bfloat16
        lane = jax.lax.broadcasted_iota(jnp.int32, (1, LB), 1)

        def shift_left(a, o):
            # a[:, i] <- a[:, i + o]; zero fill past the end of the block.
            s = (LB - o) if roll_like_jnp else o
            return jnp.where(lane < LB - o, pltpu.roll(a, s, 1), 0.0)

        def build_taps(a, p_ref):
            # Row t*R + r of p_ref is a[r] shifted left by OFFS[t]: lane-dense
            # XLU rotates + tail mask, written straight into VMEM scratch.
            R = a.shape[0]
            for t, o in enumerate(OFFS):
                p_ref[t * R:(t + 1) * R, :] = a if o == 0 else shift_left(a, o)

        # ---- conv1 (Cin=1) + bias + ReLU on the full HxW grid (f32 MXU) ----
        build_taps(x_ref[...], p1_ref)                            # (K*K, LB)
        h1 = jnp.dot(w1_ref[...], p1_ref[...],
                     preferred_element_type=f32) + b1_ref[...]
        h1 = jnp.maximum(h1, 0.0)                                 # (C1, LB)

        # ---- conv2 + bias + ReLU (tap-major, channel-minor rows) ----
        build_taps(h1, p2_ref)                                    # (K*K*C1, LB)
        h2 = jnp.dot(w2_ref[...], p2_ref[...],
                     preferred_element_type=f32) + b2_ref[...]
        h2 = jnp.maximum(h2, 0.0)                                 # (C2, LB)

        # Zero conv outputs outside the VALID (Ho2 x Wo2) window so row/sample
        # wrap junk can never reach FC1 (matching FC1 rows are also zero).
        pos = lane % HW
        valid = ((pos // W) < Ho2) & ((pos % W) < Wo2)
        h2 = jnp.where(valid, h2, 0.0)
        C2 = h2.shape[0]

        # ---- gather per-sample activation rows into scratch --------------
        # C2*n_blk lane-aligned single-row copies (bounded by the batch block);
        # preserves torch's flatten order (c, h, w) per sample.
        for n in range(n_blk):
            for c in range(C2):
                act_ref[n:n + 1, c * HW:(c + 1) * HW] = \
                    h2[c:c + 1, n * HW:(n + 1) * HW]

        # ---- FC1 + ReLU, FC2: bf16 x bf16 MXU matmuls, f32 accumulation ----
        act = act_ref[...].astype(bf16)                           # (n_blk, C2*HW)
        h = jnp.dot(act, wf1_ref[...],
                    preferred_element_type=f32) + bf1_ref[...]
        h = jnp.maximum(h, 0.0)                                   # (n_blk, 512)
        logits = jnp.dot(h.astype(bf16), wf2_ref[...],
                         preferred_element_type=f32) + bf2_ref[...]

        # ---- lane-dense softmax over the 128 padded classes ---------------
        m = jnp.max(logits, axis=1, keepdims=True)
        e = jnp.exp(logits - m)            # padded logits (-1e30) -> exp == 0
        s = jnp.sum(e, axis=1, keepdims=True)
        o_ref[...] = e * pl.reciprocal(s, approx=True)

    return kernel


def init_params(key, conv_slices, kernel_size, num_classes, image_dim):
    """Deterministic synthetic parameter init in PyTorch layout."""
    H, W = image_dim
    k, C = kernel_size, conv_slices
    Ho2, Wo2 = H - 2 * (k - 1), W - 2 * (k - 1)
    input_size = C * Ho2 * Wo2
    ks = jax.random.split(key, 8)

    def _w(kk, shape, fan_in):
        return jax.random.normal(kk, shape, jnp.float32) / np.sqrt(fan_in)

    # TODO(synk): CF_Layer's handcrafted conv1 filters are external code not
    # provided; conv1 weights are deterministically random-initialized instead.
    params = dict(
        w_conv1=_w(ks[0], (C, 1, k, k), k * k),
        b_conv1=_w(ks[1], (C,), k * k),
        w_conv2=_w(ks[2], (C, C, k, k), C * k * k),
        b_conv2=_w(ks[3], (C,), C * k * k),
        w_fc1=_w(ks[4], (512, input_size), input_size),   # PyTorch (out, in)
        b_fc1=_w(ks[5], (512,), input_size),
        w_fc2=_w(ks[6], (num_classes, 512), 512),
        b_fc2=_w(ks[7], (num_classes,), 512),
    )
    return params, input_size


def prepare_kernel_params(params, image_dim):
    """One-time (outside jit) repack of PyTorch-layout params for the kernel."""
    H, W = image_dim
    C1, _, K, _ = params["w_conv1"].shape
    C2 = params["w_conv2"].shape[0]
    Ho2, Wo2 = H - 2 * (K - 1), W - 2 * (K - 1)
    F_hidden = params["w_fc1"].shape[0]          # 512
    NCLS = params["w_fc2"].shape[0]
    PAD_CLS = max(128, ((NCLS + 127) // 128) * 128)

    # Conv weights as (Cout, taps) MXU LHS operands; tap order matches the
    # in-kernel build_taps() ordering (tap-major, channel-minor for conv2).
    w1m = params["w_conv1"].reshape(C1, K * K).astype(jnp.float32)
    w2m = params["w_conv2"].transpose(0, 2, 3, 1).reshape(
        C2, K * K * C1).astype(jnp.float32)

    # FC1: (out,in) -> (in,out); scatter the valid (c,h,w) rows onto the full
    # HxW grid (zero rows elsewhere) so the kernel needs no crop/reshape.
    wt = params["w_fc1"].T.reshape(C2, Ho2, Wo2, F_hidden)
    w1p = jnp.zeros((C2, H, W, F_hidden), jnp.float32)
    w1p = w1p.at[:, :Ho2, :Wo2, :].set(wt).reshape(C2 * H * W, F_hidden)

    # FC2: (out,in) -> (in,out), padded to a lane-dense 128-class output.
    # Padded bias = -1e30 so padded logits contribute exp(.)=0 to the softmax.
    w2p = jnp.zeros((F_hidden, PAD_CLS), jnp.float32)
    w2p = w2p.at[:, :NCLS].set(params["w_fc2"].T)
    b2p = jnp.full((1, PAD_CLS), -1e30, jnp.float32)
    b2p = b2p.at[0, :NCLS].set(params["b_fc2"])

    return dict(
        w_conv1=w1m,
        b_conv1=params["b_conv1"].reshape(C1, 1).astype(jnp.float32),
        w_conv2=w2m,
        b_conv2=params["b_conv2"].reshape(C2, 1).astype(jnp.float32),
        w_fc1=w1p.astype(jnp.bfloat16),                      # (C2*H*W, 512)
        b_fc1=params["b_fc1"].reshape(1, F_hidden).astype(jnp.float32),
        w_fc2=w2p.astype(jnp.bfloat16),                      # (512, PAD_CLS)
        b_fc2=b2p,                                           # (1, PAD_CLS)
    )


@functools.partial(jax.jit, static_argnames=("num_classes", "roll_like_jnp"))
def cf_nol_forward(x, kp, *, num_classes, roll_like_jnp):
    """Fused eval-mode forward: conv-conv-fc-fc-softmax in one pallas_call."""
    N, Cin, H, W = x.shape
    assert Cin == 1, "CF_NOL expects single-channel NCHW input"
    HW = H * W
    C1, KK = kp["w_conv1"].shape
    K = int(round(KK ** 0.5))
    PAD_CLS = kp["w_fc2"].shape[1]

    # Batch grid: n_blk samples (= n_blk*HW flattened lanes) per step.  Weights
    # use constant index maps (fetched into VMEM once); the batch axis is
    # 'parallel' so v7x's two TensorCores can split it.
    n_blk = N if N <= 8 else 8
    n_pad = -(-N // n_blk) * n_blk
    LB = n_blk * HW

    x2d = x.reshape(N, HW).astype(jnp.float32)
    if n_pad != N:
        x2d = jnp.pad(x2d, ((0, n_pad - N), (0, 0)))
    x2d = x2d.reshape(1, n_pad * HW)

    # TODO(synk): for a serving loop with fixed weights, cross-call prefetch of
    # w_fc1/w_fc2 (P10 semaphore-output futures) would hide the ~1 MiB weight
    # DMA behind preceding work; not needed for this self-contained script.
    out = pl.pallas_call(
        _make_fused_kernel(n_blk, H, W, K, roll_like_jnp),
        out_shape=jax.ShapeDtypeStruct((n_pad, PAD_CLS), jnp.float32),
        grid=(n_pad // n_blk,),
        in_specs=[
            pl.BlockSpec((1, LB), lambda i: (0, i)),            # x lane block
            pl.BlockSpec(kp["w_conv1"].shape, lambda i: (0, 0)),
            pl.BlockSpec(kp["b_conv1"].shape, lambda i: (0, 0)),
            pl.BlockSpec(kp["w_conv2"].shape, lambda i: (0, 0)),
            pl.BlockSpec(kp["b_conv2"].shape, lambda i: (0, 0)),
            pl.BlockSpec(kp["w_fc1"].shape, lambda i: (0, 0)),
            pl.BlockSpec(kp["b_fc1"].shape, lambda i: (0, 0)),
            pl.BlockSpec(kp["w_fc2"].shape, lambda i: (0, 0)),
            pl.BlockSpec(kp["b_fc2"].shape, lambda i: (0, 0)),
        ],
        out_specs=pl.BlockSpec((n_blk, PAD_CLS), lambda i: (i, 0)),
        scratch_shapes=[
            pltpu.VMEM((K * K, LB), jnp.float32),               # conv1 taps
            pltpu.VMEM((K * K * C1, LB), jnp.float32),          # conv2 taps
            pltpu.VMEM((n_blk, kp["w_fc1"].shape[0]), jnp.float32),  # act rows
        ],
        compiler_params=pltpu.CompilerParams(
            dimension_semantics=("parallel",)),
    )(x2d, kp["w_conv1"], kp["b_conv1"], kp["w_conv2"], kp["b_conv2"],
      kp["w_fc1"], kp["b_fc1"], kp["w_fc2"], kp["b_fc2"])
    return out[:N, :num_classes]


def ref_forward(x, params):
    """Pure-JAX reference reproducing the PyTorch eval-mode forward."""
    dn = ("NCHW", "OIHW", "NCHW")
    y = jax.lax.conv_general_dilated(x, params["w_conv1"], (1, 1), "VALID",
                                     dimension_numbers=dn)
    y = jax.nn.relu(y + params["b_conv1"][None, :, None, None])
    y = jax.lax.conv_general_dilated(y, params["w_conv2"], (1, 1), "VALID",
                                     dimension_numbers=dn)
    y = jax.nn.relu(y + params["b_conv2"][None, :, None, None])
    y = y.reshape(y.shape[0], -1)
    y = jax.nn.relu(y @ params["w_fc1"].T + params["b_fc1"])
    y = y @ params["w_fc2"].T + params["b_fc2"]
    return jax.nn.softmax(y, axis=1)


if __name__ == "__main__":
    conv_slices, kernel_size, num_classes = 4, 3, 10
    image_dim = (16, 16)
    batch = 2

    key = jax.random.PRNGKey(0)
    pkey, xkey = jax.random.split(key)
    params, input_size = init_params(pkey, conv_slices, kernel_size,
                                     num_classes, image_dim)

    # The kernel stores FC weights in bf16; round-trip the reference params
    # through bf16 so kernel and reference see identical weight values.
    params["w_fc1"] = params["w_fc1"].astype(jnp.bfloat16).astype(jnp.float32)
    params["w_fc2"] = params["w_fc2"].astype(jnp.bfloat16).astype(jnp.float32)

    kparams = prepare_kernel_params(params, image_dim)
    x = jax.random.normal(xkey, (batch, 1) + image_dim, jnp.float32)

    roll_like_jnp = _roll_matches_jnp()          # eager, cached Python bool
    out = jax.block_until_ready(
        cf_nol_forward(x, kparams, num_classes=num_classes,
                       roll_like_jnp=roll_like_jnp))

    assert out.shape == (batch, num_classes)
    ref = np.asarray(ref_forward(x, params))
    # bf16 FC matmul operands + approx-reciprocal softmax => slightly looser
    # tolerance than a pure-f32 comparison.
    np.testing.assert_allclose(np.asarray(out), ref, atol=1e-2, rtol=1e-2)
    assert np.allclose(np.asarray(out).sum(axis=1), 1.0, atol=5e-3)
    print("KERNEL_OK")
</pallas_src>

<mosaic_0001>
module attributes {stable_mosaic.version = 11 : i64} {
  func.func @k(%arg0: memref<1x128xf32, #tpu.memory_space<vmem>>, %arg1: memref<1x128xf32, #tpu.memory_space<vmem>>) attributes {dimension_semantics = [], scalar_prefetch = 0 : i64, scratch_operands = 0 : i64, tpu.core_type = #tpu.core_type<tc>} {
    %c0 = arith.constant 0 : index
    %c0_0 = arith.constant 0 : index
    %0 = vector.load %arg0[%c0, %c0_0] : memref<1x128xf32, #tpu.memory_space<vmem>>, vector<1x128xf32>
    %c1_i32 = arith.constant 1 : i32
    %1 = tpu.dynamic_rotate %0 by %c1_i32 dim 1 : vector<1x128xf32>, i32 -> vector<1x128xf32>
    %c0_1 = arith.constant 0 : index
    %c0_2 = arith.constant 0 : index
    %2 = vector.load %arg1[%c0_1, %c0_2] : memref<1x128xf32, #tpu.memory_space<vmem>>, vector<1x128xf32>
    tpu.vector_store %arg1[%c0_1, %c0_2], %1 {strides = array<i32>} : memref<1x128xf32, #tpu.memory_space<vmem>>, vector<1x128xf32>,
    return
  }
}

</mosaic_0001>

<bundles_post_ra>
// kernel: tpu_custom_call.1
= control target key start
LH: loop header
LB: loop body
LE: loop exit
PB: predicated region body
PF: predicated region fallthrough
CT: control target
= control target key end

     0   :  { %6 = vsyncpa [#allocation3], 0  ;;  %s106_s0 = inlined_call_operand.hbm [shape: f32[1,128], index: 0, kind: input, shape index: {}]   ;;  %s107_s1 = inlined_call_operand.hbm [shape: f32[1,128], index: 1, kind: output, shape index: {}]  }
   0x1   :  { %7 = vsyncpa [#allocation4], 0  ;;  %s87_s6 = smov [#allocation2]  }
   0x2   :  { %s14_s7 = sshll.u32 %s87_s6, 4  ;;  %s15_s7 = int_to_ptr.vmem [resolvable:$true] %s14_s7 }
   0x3   :  { %s51_s8 = scalar_lea.vmem %s15_s7, 16  ;;  %s55_s9 = scalar_lea.vmem %s15_s7, 32 }
   0x4   :  { %p52_p0 = scmp.ne.s32.totalorder %s15_s7, %s51_s8  ;;  %p56_p1 = scmp.lt.s32.totalorder %s15_s7, %s15_s7 }
   0x5   :  { %p57_p2 = scmp.lt.s32.totalorder %s55_s9, %s51_s8 }
   0x7   :  { %p58_p3 = por %p57_p2, %p56_p1 }
   0x9   :  { %p59_p4 = pnand %p58_p3, %p52_p0 }
   0xb   :  { %62 = shalt.err (!%p59_p4)
}
   0xc   :  { %17 = dma.hbm_to_vmem [thread:$0]  %s106_s0, 16, %s15_s7, [#allocation3]  }
   0xd   :  { %83 = dma.done.wait [#allocation3], 16  }
   0xe   :  { %84 = vsyncadd [#allocation3], 4294967280  ;;  %v21_v0 = vld [vmem:[#allocation2] sm:$0x1]  ;;  %s88_s12 = smov 1   ;;  %s89_s13 = smov [#allocation5]  }
   0xf   :  { %22 = vrot.lane.b32.xlu0 %v21_v0, %s88_s12  ;;  %s31_s14 = sshll.u32 %s89_s13, 4  ;;  %s32_s14 = int_to_ptr.vmem [resolvable:$true] %s31_s14 }
  0x10   :  { %s63_s15 = scalar_lea.vmem %s32_s14, 16  ;;  %s67_s16 = scalar_lea.vmem %s32_s14, 32 }
  0x11   :  { %p64_p5 = scmp.ne.s32.totalorder %s32_s14, %s63_s15  ;;  %p68_p6 = scmp.lt.s32.totalorder %s32_s14, %s32_s14 }
  0x12   :  { %p69_p7 = scmp.lt.s32.totalorder %s67_s16, %s63_s15 }
  0x14   :  { %p70_p8 = por %p69_p7, %p68_p6 }
  0x16   :  { %p71_p9 = pnand %p70_p8, %p64_p5 }
  0x81   :  { %v23_v1 = vpop.permute.xlu0 %22 }
  0x82   :  { %24 = vst [vmem:[#allocation5] sm:$0x1] %v23_v1 }
  0x83   :  { %74 = shalt.err (!%p71_p9)
}
  0x84   :  { %34 = dma.vmem_to_hbm [thread:$0]  %s32_s14, 16, %s107_s1, [#allocation4]  }
  0x85   :  { %85 = dma.done.wait [#allocation4], 16  }
  0x86   :  { %86 = vsyncadd [#allocation4], 4294967280 }
  0x87   :  { %38 = vsyncpa [#allocation3], 1 }
  0x88   :  { %39 = vsyncpa [#allocation4], 1 }

</bundles_post_ra>
